<compile_context>
chip_gen: v6e
topology: v6e:2x2x1
jax: 0.10.0
libtpu: 0.0.40
codegen_flags: <defaults>
</compile_context>

<pallas_src>
import functools

import jax
import jax.numpy as jnp
from jax.experimental import pallas as pl
from jax.experimental.pallas import tpu as pltpu


# ----------------------------------------------------------------------------
# Helpers
# ----------------------------------------------------------------------------
def _round_up(n, m):
    return ((n + m - 1) // m) * m


def _tpu_generation():
    """Generation-aware knobs: (#tensorcores to feed, tile budget, vmem cap, bf16 EUP)."""
    try:
        kind = jax.devices()[0].device_kind.lower()
    except Exception:
        kind = ""
    is_v7 = "v7" in kind
    has_bf16_eup = is_v7 or ("v6" in kind)
    if is_v7:
        # 64 MiB physical VMEM, 2 TensorCores per chip.
        return 2, 24 << 20, 44 << 20, has_bf16_eup
    # v5e / v6e (and default fallback): 128 MiB physical VMEM, 1 TensorCore.
    return 1, 64 << 20, 100 << 20, has_bf16_eup


def _auto_batch_tile(B, d_in, out_pad, max_width, param_bytes,
                     x_itemsize, out_itemsize, tile_budget, num_tc):
    """Biggest VMEM-safe batch tile (multiple of 16); >=2 steps/core only on 2-TC chips."""
    # Double-buffered x / out tiles + ~3 f32-width activation temporaries per row.
    per_row = 2 * (d_in * x_itemsize + out_pad * out_itemsize) + 3 * max_width * 4
    budget = max(tile_budget - 2 * param_bytes, 1 << 20)
    tile = budget // max(per_row, 1)
    cap = 2048 if max(d_in, max_width) <= 512 else 1024
    tile = min(cap, tile, _round_up(B, 16))
    if num_tc >= 2 and B >= 4 * 16:
        # >= 2 grid steps per TensorCore so each core keeps double-buffering its x DMA.
        tile = min(tile, _round_up(pl.cdiv(B, 2 * num_tc), 16))
    return max(16, (tile // 16) * 16)


# ----------------------------------------------------------------------------
# Kernel
# ----------------------------------------------------------------------------
def _mlp_kernel(*refs, num_layers, hidden_act, out_act, d_out_valid,
                compute_dtype, act_dtype):
    """Fused MLP forward for one batch tile.

    refs = (x_ref, w0, b0, w1, b1, ..., w_{L-1}, b_{L-1}, out_ref)
    MXU matmuls use compute_dtype operands with f32 accumulation; bias add and
    the output log-activation run in f32. All widths (incl. output) are padded
    to 128 lanes, so the final store is lane-dense / unmasked.
    """
    x_ref = refs[0]
    out_ref = refs[-1]
    params = refs[1:-1]

    h = x_ref[...]
    if h.dtype != compute_dtype:
        h = h.astype(compute_dtype)          # cast on the VPU, not in a wrapper pass

    for li in range(num_layers):
        w = params[2 * li][...]                          # (pad_in, pad_out) compute_dtype
        b = params[2 * li + 1][...].astype(jnp.float32)  # (1, pad_out) f32
        z = jnp.dot(h, w, preferred_element_type=jnp.float32) + b
        if li < num_layers - 1:
            if hidden_act == "relu":
                h = jnp.maximum(z, 0.0).astype(compute_dtype)
            elif hidden_act == "tanh":
                h = jnp.tanh(z.astype(act_dtype)).astype(compute_dtype)
            elif hidden_act == "logistic":
                h = jax.nn.sigmoid(z.astype(act_dtype)).astype(compute_dtype)
            else:  # identity
                h = z.astype(compute_dtype)
        else:
            h = z  # final logits stay f32 for the output activation

    if out_act == "logistic":
        # include_negative is already folded into the last layer's weight columns.
        out = jax.nn.log_sigmoid(h)
    elif out_act == "softmax":
        # Mask padded logit columns (zero weights -> z == 0 there) out of the LSE.
        col = jax.lax.broadcasted_iota(jnp.int32, h.shape, 1)
        valid = col < d_out_valid
        m = jnp.max(jnp.where(valid, h, -jnp.inf), axis=-1, keepdims=True)
        shifted = h - m
        e = jnp.exp(jnp.where(valid, shifted, -jnp.inf))
        lse = jnp.log(jnp.sum(e, axis=-1, keepdims=True))
        out = shifted - lse                  # padded cols are garbage, sliced off outside
    else:  # identity
        out = h

    out_ref[...] = out.astype(out_ref.dtype)


# ----------------------------------------------------------------------------
# Wrapper
# ----------------------------------------------------------------------------
def wrapped_mlp_forward(
    x,
    weights,          # list of (d_in, d_out) arrays (sklearn coefs_ layout)
    biases,           # list of (d_out,) arrays
    *,
    hidden_act="relu",
    out_act="softmax",
    include_negative=False,
    batch_tile=None,              # None -> auto (VMEM-safe, generation-aware)
    compute_dtype=jnp.bfloat16,   # jnp.float32 escape hatch for strict numerics
    out_dtype=jnp.float32,
):
    assert out_act in ("identity", "softmax", "logistic")
    assert hidden_act in ("identity", "relu", "tanh", "logistic")
    num_layers = len(weights)
    B, d_in = x.shape
    assert weights[0].shape[0] == d_in

    num_tc, tile_budget, vmem_cap, has_bf16_eup = _tpu_generation()
    compute_dtype = jnp.dtype(compute_dtype)
    act_dtype = (jnp.dtype(jnp.bfloat16)
                 if (has_bf16_eup and compute_dtype == jnp.dtype(jnp.bfloat16))
                 else jnp.dtype(jnp.float32))

    # ---- include_negative folded into the last layer -------------------------
    # [-w | w], [-b | b]: logsigmoid(z_full) then directly yields
    # [logsigmoid(-z), logsigmoid(z)] in the first two columns (exact negation).
    eff_w = [jnp.asarray(w, jnp.float32) for w in weights]
    eff_b = [jnp.asarray(b, jnp.float32) for b in biases]
    if out_act == "logistic" and include_negative and eff_w[-1].shape[1] == 1:
        eff_w[-1] = jnp.concatenate([-eff_w[-1], eff_w[-1]], axis=1)
        eff_b[-1] = jnp.concatenate([-eff_b[-1], eff_b[-1]], axis=0)
    out_dim = eff_w[-1].shape[1]

    # ---- Pad every layer's output width to 128 lanes (zero weights/bias). ----
    dims_in = [w.shape[0] for w in eff_w]
    dims_out = [w.shape[1] for w in eff_w]
    pad_out = [_round_up(d, 128) for d in dims_out]
    pad_in = [d_in] + pad_out[:-1]

    w_p, b_p = [], []
    for li in range(num_layers):
        wp = jnp.zeros((pad_in[li], pad_out[li]), compute_dtype)
        wp = wp.at[: dims_in[li], : dims_out[li]].set(eff_w[li].astype(compute_dtype))
        bp = jnp.zeros((1, pad_out[li]), jnp.float32)
        bp = bp.at[0, : dims_out[li]].set(eff_b[li])
        w_p.append(wp)
        b_p.append(bp)

    param_bytes = int(sum(w.size * w.dtype.itemsize for w in w_p)
                      + sum(b.size * 4 for b in b_p))
    out_pad = pad_out[-1]
    max_width = max(pad_out)
    x_itemsize = jnp.dtype(x.dtype).itemsize
    out_itemsize = jnp.dtype(out_dtype).itemsize

    # ---- Batch tiling: big tiles, cdiv grid, Pallas masks the partial block. -
    if batch_tile is None:
        batch_tile = _auto_batch_tile(B, d_in, out_pad, max_width, param_bytes,
                                      x_itemsize, out_itemsize, tile_budget, num_tc)
    else:
        batch_tile = max(16, (int(batch_tile) // 16) * 16)
    grid_len = pl.cdiv(B, batch_tile)

    # ---- Specs ---------------------------------------------------------------
    in_specs = [pl.BlockSpec((batch_tile, d_in), lambda i: (i, 0))]
    operands = [x]                 # original dtype; cast happens inside the kernel
    for wp, bp in zip(w_p, b_p):
        in_specs.append(pl.BlockSpec(wp.shape, lambda i: (0, 0)))
        in_specs.append(pl.BlockSpec(bp.shape, lambda i: (0, 0)))
        operands.append(wp)
        operands.append(bp)
    out_spec = pl.BlockSpec((batch_tile, out_pad), lambda i: (i, 0))

    kernel = functools.partial(
        _mlp_kernel,
        num_layers=num_layers,
        hidden_act=hidden_act,
        out_act=out_act,
        d_out_valid=out_dim,
        compute_dtype=compute_dtype,
        act_dtype=act_dtype,
    )

    # ---- VMEM limit (incl. activation temporaries) + cost estimate -----------
    tile_io = batch_tile * (d_in * x_itemsize + out_pad * out_itemsize)
    act_bytes = 3 * batch_tile * max_width * 4
    vmem_est = 2 * tile_io + 2 * param_bytes + act_bytes + (2 << 20)
    vmem_limit = int(min(max(vmem_est, 4 << 20), vmem_cap))

    flops = 2 * B * sum(pi * po for pi, po in zip(pad_in, pad_out))
    trans_per_row = 0
    if hidden_act in ("tanh", "logistic") and num_layers > 1:
        trans_per_row += sum(pad_out[:-1])
    if out_act in ("softmax", "logistic"):
        trans_per_row += 2 * out_pad
    cost = pl.CostEstimate(
        flops=int(flops),
        transcendentals=int(B * trans_per_row),
        bytes_accessed=int(B * d_in * x_itemsize + param_bytes
                           + B * out_pad * out_itemsize),
    )

    out_full = pl.pallas_call(
        kernel,
        out_shape=jax.ShapeDtypeStruct((B, out_pad), out_dtype),
        grid_spec=pl.GridSpec(
            grid=(grid_len,),
            in_specs=in_specs,
            out_specs=out_spec,
        ),
        compiler_params=pltpu.CompilerParams(
            dimension_semantics=("parallel",),
            vmem_limit_bytes=vmem_limit,
        ),
        cost_estimate=cost,
    )(*operands)

    # Lane-dense kernel output -> logical width (cheap slice over a small array).
    return out_full if out_pad == out_dim else out_full[:, :out_dim]


# ----------------------------------------------------------------------------
# Pure-JAX f32 reference (true PyTorch _WrappedMLP semantics, for checking)
# ----------------------------------------------------------------------------
def reference_forward(x, weights, biases, hidden_act, out_act, include_negative):
    h = x.astype(jnp.float32)
    L = len(weights)
    hp = jax.lax.Precision.HIGHEST
    for li, (w, b) in enumerate(zip(weights, biases)):
        z = jnp.dot(h, w.astype(jnp.float32), precision=hp) + b.astype(jnp.float32)
        if li < L - 1:
            if hidden_act == "relu":
                h = jnp.maximum(z, 0.0)
            elif hidden_act == "tanh":
                h = jnp.tanh(z)
            elif hidden_act == "logistic":
                h = jax.nn.sigmoid(z)
            else:
                h = z
        else:
            h = z
    if out_act == "logistic" and include_negative and h.shape[1] == 1:
        return jnp.concatenate([jax.nn.log_sigmoid(-h), jax.nn.log_sigmoid(h)], axis=-1)
    if out_act == "logistic":
        return jax.nn.log_sigmoid(h)
    if out_act == "softmax":
        return jax.nn.log_softmax(h, axis=-1)
    return h


# ----------------------------------------------------------------------------
# Demo
# ----------------------------------------------------------------------------
if __name__ == "__main__":
    key = jax.random.PRNGKey(0)

    B, D_IN = 16, 32
    HIDDEN = [64, 32]

    def make_params(key, dims):
        ws, bs = [], []
        for d_i, d_o in zip(dims[:-1], dims[1:]):
            key, kw, kb = jax.random.split(key, 3)
            ws.append(jax.random.normal(kw, (d_i, d_o), jnp.float32) * 0.1)
            bs.append(jax.random.normal(kb, (d_o,), jnp.float32) * 0.1)
        return key, ws, bs

    key, kx = jax.random.split(key)
    x = jax.random.normal(kx, (B, D_IN), jnp.float32)

    # Case 1: classifier-style MLP, relu hidden, softmax output (log_softmax), bf16 compute.
    key, w_sm, b_sm = make_params(key, [D_IN] + HIDDEN + [8])
    out_sm = wrapped_mlp_forward(x, w_sm, b_sm, hidden_act="relu", out_act="softmax")
    jax.block_until_ready(out_sm)
    ref_sm = reference_forward(x, w_sm, b_sm, "relu", "softmax", False)
    assert out_sm.shape == (B, 8)
    assert jnp.allclose(out_sm, ref_sm, atol=2e-2, rtol=2e-2)

    # Case 1b: same net with the f32 compute escape hatch (exercises f32 MXU path).
    out_sm32 = wrapped_mlp_forward(x, w_sm, b_sm, hidden_act="relu", out_act="softmax",
                                   compute_dtype=jnp.float32)
    jax.block_until_ready(out_sm32)
    assert jnp.allclose(out_sm32, ref_sm, atol=2e-2, rtol=2e-2)

    # Case 2: binary classifier, tanh hidden, logistic output with
    # include_negative=True -> output shape (B, 2).
    key, w_lg, b_lg = make_params(key, [D_IN] + HIDDEN + [1])
    out_lg = wrapped_mlp_forward(
        x, w_lg, b_lg, hidden_act="tanh", out_act="logistic", include_negative=True
    )
    jax.block_until_ready(out_lg)
    ref_lg = reference_forward(x, w_lg, b_lg, "tanh", "logistic", True)
    assert out_lg.shape == (B, 2)
    assert jnp.allclose(out_lg, ref_lg, atol=2e-2, rtol=2e-2)

    # Case 3: regressor (identity output) with a batch size that is NOT a
    # multiple of the tile -> exercises the cdiv-grid partial-last-block path.
    B_ODD = 13
    key, kx2 = jax.random.split(key)
    x_odd = jax.random.normal(kx2, (B_ODD, D_IN), jnp.float32)
    key, w_id, b_id = make_params(key, [D_IN] + HIDDEN + [4])
    out_id = wrapped_mlp_forward(x_odd, w_id, b_id, hidden_act="relu", out_act="identity")
    jax.block_until_ready(out_id)
    ref_id = reference_forward(x_odd, w_id, b_id, "relu", "identity", False)
    assert out_id.shape == (B_ODD, 4)
    assert jnp.allclose(out_id, ref_id, atol=2e-2, rtol=2e-2)

    print("KERNEL_OK")
</pallas_src>

<mosaic_0001>
module attributes {stable_mosaic.version = 11 : i64} {
  func.func @_mlp_kernel(%arg0: i32, %arg1: memref<16x32xf32, #tpu.memory_space<vmem>>, %arg2: memref<32x128xbf16, #tpu.memory_space<vmem>>, %arg3: memref<1x128xf32, #tpu.memory_space<vmem>>, %arg4: memref<128x128xbf16, #tpu.memory_space<vmem>>, %arg5: memref<1x128xf32, #tpu.memory_space<vmem>>, %arg6: memref<128x128xbf16, #tpu.memory_space<vmem>>, %arg7: memref<1x128xf32, #tpu.memory_space<vmem>>, %arg8: memref<16x128xf32, #tpu.memory_space<vmem>>) attributes {dimension_semantics = [#tpu.dimension_semantics<parallel>], iteration_bounds = array<i64: 1>, scalar_prefetch = 0 : i64, scratch_operands = 0 : i64, tpu.core_type = #tpu.core_type<tc>, window_params = [{transform_indices = @transform_0, window_bounds = array<i64: 16, 32>}, {pipeline_mode = #tpu.pipeline_mode<synchronous>, transform_indices = @transform_1, window_bounds = array<i64: 32, 128>}, {pipeline_mode = #tpu.pipeline_mode<synchronous>, transform_indices = @transform_2, window_bounds = array<i64: 1, 128>}, {pipeline_mode = #tpu.pipeline_mode<synchronous>, transform_indices = @transform_3, window_bounds = array<i64: 128, 128>}, {pipeline_mode = #tpu.pipeline_mode<synchronous>, transform_indices = @transform_4, window_bounds = array<i64: 1, 128>}, {pipeline_mode = #tpu.pipeline_mode<synchronous>, transform_indices = @transform_5, window_bounds = array<i64: 128, 128>}, {pipeline_mode = #tpu.pipeline_mode<synchronous>, transform_indices = @transform_6, window_bounds = array<i64: 1, 128>}, {transform_indices = @transform_7, window_bounds = array<i64: 16, 128>}]} {
    %c0 = arith.constant 0 : index
    %c0_0 = arith.constant 0 : index
    %0 = vector.load %arg1[%c0, %c0_0] : memref<16x32xf32, #tpu.memory_space<vmem>>, vector<16x32xf32>
    %1 = arith.truncf %0 : vector<16x32xf32> to vector<16x32xbf16>
    %c0_1 = arith.constant 0 : index
    %c0_2 = arith.constant 0 : index
    %2 = vector.load %arg2[%c0_1, %c0_2] : memref<32x128xbf16, #tpu.memory_space<vmem>>, vector<32x128xbf16>
    %c0_3 = arith.constant 0 : index
    %c0_4 = arith.constant 0 : index
    %3 = vector.load %arg3[%c0_3, %c0_4] : memref<1x128xf32, #tpu.memory_space<vmem>>, vector<1x128xf32>
    %cst = arith.constant dense<0.000000e+00> : vector<16x128xf32>
    %4 = tpu.matmul %1, %2, %cst {dimension_numbers = #tpu.dot_dimension_numbers<[1], [0], [0], [1], [0, 0, 1, 1], [], []>} : vector<16x32xbf16>, vector<32x128xbf16>, vector<16x128xf32> -> vector<16x128xf32>
    %5 = vector.broadcast %3 : vector<1x128xf32> to vector<16x128xf32>
    %6 = arith.addf %4, %5 : vector<16x128xf32>
    %cst_5 = arith.constant 0.000000e+00 : f32
    %7 = vector.broadcast %cst_5 : f32 to vector<16x128xf32>
    %8 = arith.maximumf %6, %7 : vector<16x128xf32>
    %9 = arith.truncf %8 : vector<16x128xf32> to vector<16x128xbf16>
    %c0_6 = arith.constant 0 : index
    %c0_7 = arith.constant 0 : index
    %10 = vector.load %arg4[%c0_6, %c0_7] : memref<128x128xbf16, #tpu.memory_space<vmem>>, vector<128x128xbf16>
    %c0_8 = arith.constant 0 : index
    %c0_9 = arith.constant 0 : index
    %11 = vector.load %arg5[%c0_8, %c0_9] : memref<1x128xf32, #tpu.memory_space<vmem>>, vector<1x128xf32>
    %cst_10 = arith.constant dense<0.000000e+00> : vector<16x128xf32>
    %12 = tpu.matmul %9, %10, %cst_10 {dimension_numbers = #tpu.dot_dimension_numbers<[1], [0], [0], [1], [0, 0, 1, 1], [], []>} : vector<16x128xbf16>, vector<128x128xbf16>, vector<16x128xf32> -> vector<16x128xf32>
    %13 = vector.broadcast %11 : vector<1x128xf32> to vector<16x128xf32>
    %14 = arith.addf %12, %13 : vector<16x128xf32>
    %cst_11 = arith.constant 0.000000e+00 : f32
    %15 = vector.broadcast %cst_11 : f32 to vector<16x128xf32>
    %16 = arith.maximumf %14, %15 : vector<16x128xf32>
    %17 = arith.truncf %16 : vector<16x128xf32> to vector<16x128xbf16>
    %c0_12 = arith.constant 0 : index
    %c0_13 = arith.constant 0 : index
    %18 = vector.load %arg6[%c0_12, %c0_13] : memref<128x128xbf16, #tpu.memory_space<vmem>>, vector<128x128xbf16>
    %c0_14 = arith.constant 0 : index
    %c0_15 = arith.constant 0 : index
    %19 = vector.load %arg7[%c0_14, %c0_15] : memref<1x128xf32, #tpu.memory_space<vmem>>, vector<1x128xf32>
    %cst_16 = arith.constant dense<0.000000e+00> : vector<16x128xf32>
    %20 = tpu.matmul %17, %18, %cst_16 {dimension_numbers = #tpu.dot_dimension_numbers<[1], [0], [0], [1], [0, 0, 1, 1], [], []>} : vector<16x128xbf16>, vector<128x128xbf16>, vector<16x128xf32> -> vector<16x128xf32>
    %21 = vector.broadcast %19 : vector<1x128xf32> to vector<16x128xf32>
    %22 = arith.addf %20, %21 : vector<16x128xf32>
    %23 = tpu.iota {dimensions = array<i32: 1>} : vector<16x128xi32>
    %c8_i32 = arith.constant 8 : i32
    %24 = vector.broadcast %c8_i32 : i32 to vector<16x128xi32>
    %25 = arith.cmpi slt, %23, %24 : vector<16x128xi32>
    %cst_17 = arith.constant 0xFF800000 : f32
    %26 = vector.broadcast %cst_17 : f32 to vector<16x128xf32>
    %27 = arith.select %25, %22, %26 : vector<16x128xi1>, vector<16x128xf32>
    %cst_18 = arith.constant dense<0xFF800000> : vector<16xf32>
    %28 = vector.multi_reduction <maximumf>, %27, %cst_18 [1] : vector<16x128xf32> to vector<16xf32>
    %29 = vector.shape_cast %28 : vector<16xf32> to vector<16x1xf32>
    %30 = vector.broadcast %29 : vector<16x1xf32> to vector<16x128xf32>
    %31 = arith.subf %22, %30 : vector<16x128xf32>
    %cst_19 = arith.constant 0xFF800000 : f32
    %32 = vector.broadcast %cst_19 : f32 to vector<16x128xf32>
    %33 = arith.select %25, %31, %32 : vector<16x128xi1>, vector<16x128xf32>
    %34 = math.exp %33 : vector<16x128xf32>
    %cst_20 = arith.constant dense<0.000000e+00> : vector<16xf32>
    %35 = vector.multi_reduction <add>, %34, %cst_20 [1] : vector<16x128xf32> to vector<16xf32>
    %36 = vector.shape_cast %35 : vector<16xf32> to vector<16x1xf32>
    %37 = math.log %36 : vector<16x1xf32>
    %38 = vector.broadcast %37 : vector<16x1xf32> to vector<16x128xf32>
    %39 = arith.subf %31, %38 : vector<16x128xf32>
    %c0_21 = arith.constant 0 : index
    %c0_22 = arith.constant 0 : index
    %40 = vector.load %arg8[%c0_21, %c0_22] : memref<16x128xf32, #tpu.memory_space<vmem>>, vector<16x128xf32>
    tpu.vector_store %arg8[%c0_21, %c0_22], %39 {strides = array<i32>} : memref<16x128xf32, #tpu.memory_space<vmem>>, vector<16x128xf32>,
    return
  }
  func.func @transform_0(%arg0: i32) -> (i32, i32) {
    %c0_i32 = arith.constant 0 : i32
    %c0_i32_0 = arith.constant 0 : i32
    return %arg0, %c0_i32 : i32, i32
  }
  func.func @transform_1(%arg0: i32) -> (i32, i32) {
    %c0_i32 = arith.constant 0 : i32
    %c0_i32_0 = arith.constant 0 : i32
    %c0_i32_1 = arith.constant 0 : i32
    return %c0_i32, %c0_i32_0 : i32, i32
  }
  func.func @transform_2(%arg0: i32) -> (i32, i32) {
    %c0_i32 = arith.constant 0 : i32
    %c0_i32_0 = arith.constant 0 : i32
    %c0_i32_1 = arith.constant 0 : i32
    return %c0_i32, %c0_i32_0 : i32, i32
  }
  func.func @transform_3(%arg0: i32) -> (i32, i32) {
    %c0_i32 = arith.constant 0 : i32
    %c0_i32_0 = arith.constant 0 : i32
    %c0_i32_1 = arith.constant 0 : i32
    return %c0_i32, %c0_i32_0 : i32, i32
  }
  func.func @transform_4(%arg0: i32) -> (i32, i32) {
    %c0_i32 = arith.constant 0 : i32
    %c0_i32_0 = arith.constant 0 : i32
    %c0_i32_1 = arith.constant 0 : i32
    return %c0_i32, %c0_i32_0 : i32, i32
  }
  func.func @transform_5(%arg0: i32) -> (i32, i32) {
    %c0_i32 = arith.constant 0 : i32
    %c0_i32_0 = arith.constant 0 : i32
    %c0_i32_1 = arith.constant 0 : i32
    return %c0_i32, %c0_i32_0 : i32, i32
  }
  func.func @transform_6(%arg0: i32) -> (i32, i32) {
    %c0_i32 = arith.constant 0 : i32
    %c0_i32_0 = arith.constant 0 : i32
    %c0_i32_1 = arith.constant 0 : i32
    return %c0_i32, %c0_i32_0 : i32, i32
  }
  func.func @transform_7(%arg0: i32) -> (i32, i32) {
    %c0_i32 = arith.constant 0 : i32
    %c0_i32_0 = arith.constant 0 : i32
    return %arg0, %c0_i32 : i32, i32
  }
}

</mosaic_0001>

<bundles_post_ra>
// kernel: tpu_custom_call.1
= control target key start
LH: loop header
LB: loop body
LE: loop exit
PB: predicated region body
PF: predicated region fallthrough
CT: control target
= control target key end

     0   :  { %12 = vsyncpa [#allocation3], 0  ;;  %s786_s0 = inlined_call_operand.hbm [shape: f32[16,32], index: 0, kind: input, shape index: {}]   ;;  %s787_s1 = inlined_call_operand.hbm [shape: bf16[32,128], index: 1, kind: input, shape index: {}]   ;;  %s788_s2 = inlined_call_operand.vmem [shape: f32[1,128], index: 2, kind: input, shape index: {}]   ;;  %s789_s3 = inlined_call_operand.hbm [shape: bf16[128,128], index: 3, kind: input, shape index: {}]   ;;  %s790_s4 = inlined_call_operand.vmem [shape: f32[1,128], index: 4, kind: input, shape index: {}]   ;;  %s791_s5 = inlined_call_operand.hbm [shape: bf16[128,128], index: 5, kind: input, shape index: {}]   ;;  %s792_s6 = inlined_call_operand.vmem [shape: f32[1,128], index: 6, kind: input, shape index: {}]   ;;  %s793_s7 = inlined_call_operand.hbm [shape: f32[16,128], index: 7, kind: output, shape index: {}]  }
   0x1   :  { %13 = vsyncpa [#allocation6], 0 }
   0x2   :  { %14 = vsyncpa [#allocation9], 0 }
   0x3   :  { %15 = vsyncpa [#allocation4], 0  ;;  %s668_s24 = smov [#allocation5]  }
   0x4   :  { %s33_s25 = sshll.u32 %s668_s24, 4  ;;  %s34_s25 = int_to_ptr.vmem [resolvable:$true] %s33_s25 }
   0x5   :  { %s568_s26 = scalar_lea.vmem %s34_s25, 256  ;;  %p573_p1 = scmp.lt.s32.totalorder %s34_s25, %s34_s25 }
   0x6   :  { %p569_p0 = scmp.ne.s32.totalorder %s34_s25, %s568_s26  ;;  %p574_p2 = scmp.lt.s32.totalorder %s568_s26, %s568_s26 }
   0x8   :  { %p575_p3 = por %p574_p2, %p573_p1 }
   0xa   :  { %p576_p4 = pnand %p575_p3, %p569_p0 }
   0xc   :  { %579 = shalt.err (!%p576_p4)
}
   0xd   :  { %s669_s27 = smov 64   ;;  %s670_s28 = smov 4  }
   0xe   :  { %39 = dma.hbm_to_vmem [thread:$0]  %s787_s1, 256, %s34_s25, [#allocation6], %s669_s27, %s669_s27, %s670_s28  }
   0xf   :  { %s671_s8 = smov [#allocation2]  }
  0x10   :  { %s21_s9 = sshll.u32 %s671_s8, 4  ;;  %s22_s9 = int_to_ptr.vmem [resolvable:$true] %s21_s9 }
  0x11   :  { %s588_s10 = scalar_lea.vmem %s22_s9, 256  ;;  %p593_p6 = scmp.lt.s32.totalorder %s22_s9, %s22_s9 }
  0x12   :  { %p589_p5 = scmp.ne.s32.totalorder %s22_s9, %s588_s10  ;;  %p594_p7 = scmp.lt.s32.totalorder %s588_s10, %s588_s10 }
  0x14   :  { %p595_p8 = por %p594_p7, %p593_p6 }
  0x16   :  { %p596_p9 = pnand %p595_p8, %p589_p5 }
  0x18   :  { %599 = shalt.err (!%p596_p9)
}
  0x19   :  { %s672_s11 = smov 128   ;;  %s673_s12 = smov 8  }
  0x1a   :  { %27 = dma.hbm_to_vmem [thread:$0]  %s786_s0, 256, %s22_s9, [#allocation3], %s672_s11, %s672_s11, %s673_s12  }
  0x1b   :  { %s674_s1 = smov [#allocation7]   ;;  %s675_s16 = smov [#allocation8]  }
  0x1c   :  { %s47_s15 = sshll.u32 %s674_s1, 4  ;;  %s61_s17 = sshll.u32 %s675_s16, 4  ;;  %s48_s15 = int_to_ptr.vmem [resolvable:$true] %s47_s15  ;;  %s62_s17 = int_to_ptr.vmem [resolvable:$true] %s61_s17 }
  0x1d   :  { %s608_s18 = scalar_lea.vmem %s48_s15, 1024  ;;  %p613_p11 = scmp.lt.s32.totalorder %s48_s15, %s48_s15 }
  0x1e   :  { %p609_p10 = scmp.ne.s32.totalorder %s48_s15, %s608_s18  ;;  %p614_p12 = scmp.lt.s32.totalorder %s608_s18, %s608_s18 }
  0x20   :  { %p615_p13 = por %p614_p12, %p613_p11 }
  0x22   :  { %p616_p0 = pnand %p615_p13, %p609_p10 }
  0x24   :  { %619 = shalt.err (!%p616_p0)
}
  0x25   :  { %53 = dma.hbm_to_vmem [thread:$0]  %s789_s3, 1024, %s48_s15, [#allocation6], %s669_s27, %s669_s27, %s670_s28  }
  0x26   :  { %s628_s0 = scalar_lea.vmem %s62_s17, 1024  ;;  %p633_p2 = scmp.lt.s32.totalorder %s62_s17, %s62_s17 }
  0x27   :  { %p629_p1 = scmp.ne.s32.totalorder %s62_s17, %s628_s0  ;;  %p634_p3 = scmp.lt.s32.totalorder %s628_s0, %s628_s0 }
  0x29   :  { %p635_p4 = por %p634_p3, %p633_p2 }
  0x2b   :  { %p636_p5 = pnand %p635_p4, %p629_p1 }
  0x2d   :  { %639 = shalt.err (!%p636_p5)
}
  0x2e   :  { %67 = dma.hbm_to_vmem [thread:$0]  %s791_s5, 1024, %s62_s17, [#allocation9], %s669_s27, %s669_s27, %s670_s28  }
  0x2f   :  { %660 = dma.done.wait [#allocation3], 256  }
  0x30   :  { %661 = vsyncadd [#allocation3], 4294967040 }
  0x31   :  { %662 = dma.done.wait [#allocation6], 1280  }
  0x32   :  { %663 = vsyncadd [#allocation6], 4294966016 }
  0x33   :  { %664 = dma.done.wait [#allocation9], 1024  }
  0x34   :  { %665 = vsyncadd [#allocation9], 4294966272  ;;  %v676_v0 = vmov 0.0   ;;  %vm677_vm0 = vmmov 0   ;;  %v534_v1 = vld [vmem:[#allocation5 + $0x8] sm:$0xff]   ;;  %v535_v2 = vld [vmem:[#allocation5] sm:$0xff]   ;;  %v384_v42 = vlaneseq }
  0x35   :  { %475 = vmatprep.subr.bf16.mxu0 %v676_v0  ;;  %479 = vmatprep.mubr.msk.bf16.mxu0 %vm677_vm0, %v676_v0  ;;  %v83_v3 = vld [vmem:[#allocation2] sm:$0xff]  ;;  %v84_v4 = vld [vmem:[#allocation2 + $0x8] sm:$0xff]  ;;  %v536_v5 = vld [vmem:[#allocation7 + $0x38] sm:$0xff]   ;;  %vm109_vm1 = vcmask 261120  }
  0x36   :  { %483 = vmatprep.subr.bf16.mxu1 %v676_v0  ;;  %499 = vmatprep.mubr.msk.bf16.mxu1 %vm677_vm0, %v676_v0  ;;  %v85_v6 = vpack.c.bf16 %v84_v4, %v83_v3  ;;  %v537_v7 = vld [vmem:[#allocation7 + $0x30] sm:$0xff]   ;;  %v538_v8 = vld [vmem:[#allocation7 + $0x28] sm:$0xff]   ;;  %v539_v9 = vld [vmem:[#allocation7 + $0x20] sm:$0xff]   ;;  %v385_v43 = vand.u32 127, %v384_v42 }
  0x37   :  { %476 = vmatpush3.bf16.msra.mxu0 %v534_v1  ;;  %484 = vmatpush3.bf16.msra.mxu1 %v536_v5  ;;  %v540_v10 = vld [vmem:[#allocation7 + $0x18] sm:$0xff]   ;;  %v541_v11 = vld [vmem:[#allocation7 + $0x10] sm:$0xff]   ;;  %v542_v12 = vld [vmem:[#allocation7 + $0x8] sm:$0xff]  }
  0x38   :  { %477 = vmatprep.subr.bf16.mxu0 %v676_v0  ;;  %485 = vmatprep.subr.bf16.mxu1 %v676_v0  ;;  %v543_v13 = vld [vmem:[#allocation7] sm:$0xff]   ;;  %v544_v14 = vld [vmem:[#allocation8 + $0x38] sm:$0xff]   ;;  %v545_v15 = vld [vmem:[#allocation8 + $0x30] sm:$0xff]   ;;  %vm386_vm2 = vcmp.lt.s32.totalorder %v385_v43, 8 }
  0x39   :  { %v546_v16 = vld [vmem:[#allocation8 + $0x28] sm:$0xff]   ;;  %v547_v17 = vld [vmem:[#allocation8 + $0x20] sm:$0xff]   ;;  %v548_v18 = vld [vmem:[#allocation8 + $0x18] sm:$0xff]  }
  0x3a   :  { %v432_v19 = vld [vmem:[%s788_s2] ss:$0 sm:$0xff]  ;;  %v549_v29 = vld [vmem:[#allocation8 + $0x10] sm:$0xff]   ;;  %v550_v30 = vld [vmem:[#allocation8 + $0x8] sm:$0xff]  }
  0x3b   :  { %478 = vmatpush3.bf16.msra.mxu0 %v535_v2  ;;  %486 = vmatpush3.bf16.msra.mxu1 %v537_v7  ;;  %v551_v31 = vld [vmem:[#allocation8] sm:$0xff]  }
  0x3c   :  { %503 = vmatprep.subr.bf16.mxu0 %v676_v0  ;;  %487 = vmatprep.subr.bf16.mxu1 %v676_v0  ;;  %v436_v32 = vld [vmem:[%s790_s4] ss:$0 sm:$0xff]  ;;  %s678_s4 = smov [#allocation10]  }
  0x3d   :  { %v445_v44 = vld [vmem:[%s792_s6] ss:$0 sm:$0xff]  ;;  %s418_s6 = sshll.u32 %s678_s4, 4  ;;  %s419_s6 = int_to_ptr.vmem [resolvable:$true] %s418_s6 }
  0x3e   :  { %480 = vmatmul.mubr.msk.bf16.vlgmr.msra.gmra.mxu0 %vm109_vm1, %v85_v6  ;;  %s640_s26 = scalar_lea.vmem %s419_s6, 256  ;;  %p645_p7 = scmp.lt.s32.totalorder %s419_s6, %s419_s6 }
  0x3f   :  { %519 = vmatprep.mubr.msk.bf16.mxu0 %vm677_vm0, %v676_v0  ;;  %488 = vmatpush3.bf16.msra.mxu1 %v538_v8  ;;  %p641_p6 = scmp.ne.s32.totalorder %s419_s6, %s640_s26  ;;  %p646_p8 = scmp.lt.s32.totalorder %s640_s26, %s640_s26 }
  0x40   :  { %489 = vmatprep.subr.bf16.mxu1 %v676_v0  ;;  %504 = vmatpush3.bf16.msra.mxu0 %v544_v14 }
  0x41   :  { %505 = vmatprep.subr.bf16.mxu0 %v676_v0  ;;  %p647_p9 = por %p646_p8, %p645_p7 }
  0x43   :  { %490 = vmatpush3.bf16.msra.mxu1 %v539_v9  ;;  %p648_p10 = pnand %p647_p9, %p641_p6 }
  0x44   :  { %491 = vmatprep.subr.bf16.mxu1 %v676_v0  ;;  %506 = vmatpush3.bf16.msra.mxu0 %v545_v15 }
  0x45   :  { %507 = vmatprep.subr.bf16.mxu0 %v676_v0 }
  0x47   :  { %492 = vmatpush3.bf16.msra.mxu1 %v540_v10 }
  0x48   :  { %493 = vmatprep.subr.bf16.mxu1 %v676_v0  ;;  %508 = vmatpush3.bf16.msra.mxu0 %v546_v16 }
  0x49   :  { %509 = vmatprep.subr.bf16.mxu0 %v676_v0 }
  0x4b   :  { %494 = vmatpush3.bf16.msra.mxu1 %v541_v11 }
  0x4c   :  { %495 = vmatprep.subr.bf16.mxu1 %v676_v0  ;;  %510 = vmatpush3.bf16.msra.mxu0 %v547_v17 }
  0x4d   :  { %511 = vmatprep.subr.bf16.mxu0 %v676_v0 }
  0x4f   :  { %496 = vmatpush3.bf16.msra.mxu1 %v542_v12 }
  0x50   :  { %497 = vmatprep.subr.bf16.mxu1 %v676_v0  ;;  %512 = vmatpush3.bf16.msra.mxu0 %v548_v18 }
  0x51   :  { %513 = vmatprep.subr.bf16.mxu0 %v676_v0 }
  0x53   :  { %498 = vmatpush3.bf16.msra.mxu1 %v543_v13 }
  0x54   :  { %514 = vmatpush3.bf16.msra.mxu0 %v549_v29 }
  0x55   :  { %515 = vmatprep.subr.bf16.mxu0 %v676_v0 }
  0x58   :  { %516 = vmatpush3.bf16.msra.mxu0 %v550_v30 }
  0x59   :  { %517 = vmatprep.subr.bf16.mxu0 %v676_v0 }
  0x5c   :  { %518 = vmatpush3.bf16.msra.mxu0 %v551_v31 }
  0xfe   :  { %v147_v20 = vpop.f32.mrf.mxu0 }
  0xff   :  { %v148_v22 = vadd.f32 %v432_v19, %v147_v20 }
 0x100   :  { %v481_v21 = vpop.f32.mrf.mxu0 }
 0x101   :  { %v154_v26 = vmax.f32 %v148_v22, 0.0 }
 0x102   :  { %v150_v23 = vpop.f32.mrf.mxu0 }
 0x103   :  { %v151_v24 = vadd.f32 %v432_v19, %v150_v23 }
 0x104   :  { %v482_v25 = vpop.f32.mrf.mxu0 }
 0x105   :  { %v155_v27 = vmax.f32 %v151_v24, 0.0 }
 0x107   :  { %v156_v28 = vpack.c.bf16 %v155_v27, %v154_v26 }
 0x109   :  { %500 = vmatmul.mubr.bf16.vlgmr.msra.gmra.mxu1 %v156_v28 }
 0x1c9   :  { %v262_v33 = vpop.f32.mrf.mxu1 }
 0x1ca   :  { %v263_v35 = vadd.f32 %v436_v32, %v262_v33 }
 0x1cb   :  { %v501_v34 = vpop.f32.mrf.mxu1 }
 0x1cc   :  { %v269_v39 = vmax.f32 %v263_v35, 0.0 }
 0x1cd   :  { %v265_v36 = vpop.f32.mrf.mxu1 }
 0x1ce   :  { %v266_v37 = vadd.f32 %v436_v32, %v265_v36 }
 0x1cf   :  { %v502_v38 = vpop.f32.mrf.mxu1 }
 0x1d0   :  { %v270_v40 = vmax.f32 %v266_v37, 0.0 }
 0x1d2   :  { %v271_v41 = vpack.c.bf16 %v270_v40, %v269_v39 }
 0x1d4   :  { %520 = vmatmul.mubr.bf16.vlgmr.msra.gmra.mxu0 %v271_v41 }
 0x294   :  { %v377_v45 = vpop.f32.mrf.mxu0 }
 0x295   :  { %v378_v46 = vadd.f32 %v445_v44, %v377_v45 }
 0x296   :  { %v521_v47 = vpop.f32.mrf.mxu0 }
 0x297   :  { %v387_v48 = vsel %vm386_vm2, %v378_v46, -inf }
 0x298   :  { %389 = vmax.xlane.f32.xlu0 %v387_v48  ;;  %v380_v49 = vpop.f32.mrf.mxu0 }
 0x299   :  { %v381_v50 = vadd.f32 %v445_v44, %v380_v49 }
 0x29a   :  { %v522_v51 = vpop.f32.mrf.mxu0 }
 0x29b   :  { %v388_v52 = vsel %vm386_vm2, %v381_v50, -inf }
 0x29c   :  { %391 = vmax.xlane.f32.xlu0 %v388_v52 }
 0x321   :  { %v390_v53 = vpop.xlane.xlu0 %389 }
 0x322   :  { %v393_v54 = vsub.f32 %v378_v46, %v390_v53 }
 0x324   :  { %v395_v55 = vsel %vm386_vm2, %v393_v54, -inf }
 0x325   :  { %v397_v56 = vmul.f32 1.442695, %v395_v55  ;;  %v392_v57 = vpop.xlane.xlu0 %391 }
 0x326   :  { %v394_v58 = vsub.f32 %v381_v50, %v392_v57 }
 0x327   :  { %552 = vpow2.f32 %v397_v56 }
 0x328   :  { %v396_v59 = vsel %vm386_vm2, %v394_v58, -inf }
 0x329   :  { %v399_v60 = vmul.f32 1.442695, %v396_v59 }
 0x32b   :  { %554 = vpow2.f32 %v399_v60 }
 0x334   :  { %v553_v61 = vpop.eup %552 }
 0x335   :  { %401 = vadd.xlane.f32.xlu1 %v553_v61 }
 0x338   :  { %v555_v62 = vpop.eup %554 }
 0x339   :  { %403 = vadd.xlane.f32.xlu1 %v555_v62 }
 0x3be   :  { %v402_v63 = vpop.xlane.xlu1 %401 }
 0x3bf   :  { %556 = vlog2.f32 %v402_v63 }
 0x3c2   :  { %v404_v0 = vpop.xlane.xlu1 %403 }
 0x3c3   :  { %558 = vlog2.f32 %v404_v0 }
 0x3cc   :  { %v557_v1 = vpop.eup %556 }
 0x3cd   :  { %v406_v2 = vmul.f32 0.6931472, %v557_v1 }
 0x3cf   :  { %v409_v3 = vsub.f32 %v393_v54, %v406_v2 }
 0x3d0   :  { %v559_v4 = vpop.eup %558 }
 0x3d1   :  { %v408_v5 = vmul.f32 0.6931472, %v559_v4  ;;  %411 = vst [vmem:[#allocation10] sm:$0xff] %v409_v3 }
 0x3d3   :  { %v410_v6 = vsub.f32 %v394_v58, %v408_v5 }
 0x3d5   :  { %412 = vst [vmem:[#allocation10 + $0x8] sm:$0xff] %v410_v6 }
 0x3d6   :  { %651 = shalt.err (!%p648_p10)
}
 0x3d7   :  { %424 = dma.vmem_to_hbm [thread:$0]  %s419_s6, 256, %s793_s7, [#allocation4], %s672_s11, %s672_s11, %s673_s12  }
 0x3d8   :  { %666 = dma.done.wait [#allocation4], 256  }
 0x3d9   :  { %667 = vsyncadd [#allocation4], 4294967040 }
 0x3da   :  { %428 = vsyncpa [#allocation3], 1 }
 0x3db   :  { %429 = vsyncpa [#allocation6], 1 }
 0x3dc   :  { %430 = vsyncpa [#allocation9], 1 }
 0x3dd   :  { %431 = vsyncpa [#allocation4], 1 }

</bundles_post_ra>
